<compile_context>
chip_gen: v5e
topology: v5e:2x2
jax: 0.10.0
libtpu: 0.0.40
codegen_flags: <defaults>
</compile_context>

<pallas_src>
import functools

import jax
import jax.numpy as jnp
from jax.experimental import pallas as pl
from jax.experimental.pallas import tpu as pltpu

NUM_HIDDEN_LAYERS = 10
NUM_LAYERS = NUM_HIDDEN_LAYERS + 1   # + output head
PAD = 128                            # lane width / common padded feature dim


# ---------------------------------------------------------------------------
# Kernel
# ---------------------------------------------------------------------------
def bnn_kernel(x_ref, w_ref, b_ref, o_ref):
    """Fused 11-layer MLP.

    x_ref : (TB, PAD)               bf16  zero-padded input block
    w_ref : (NUM_LAYERS, PAD, PAD)  bf16  zero-padded, (in, out) layout
    b_ref : (NUM_LAYERS, 1, PAD)    f32   zero-padded
    o_ref : (TB, PAD)               f32   padded output (cols >= output_size are 0)
    """
    h = x_ref[...]                                          # (TB, PAD) bf16

    # 10 hidden layers: relu(h @ W + b)
    #   bf16 operands on the MXU, f32 accumulation, f32 bias add,
    #   then downcast + ReLU in bf16 (identical to relu-then-cast).
    for i in range(NUM_HIDDEN_LAYERS):
        acc = jnp.dot(h, w_ref[i],
                      preferred_element_type=jnp.float32) + b_ref[i]
        h = jnp.maximum(acc.astype(jnp.bfloat16), 0.0)

    # output head (no activation), stored in f32
    o_ref[...] = (jnp.dot(h, w_ref[NUM_HIDDEN_LAYERS],
                          preferred_element_type=jnp.float32)
                  + b_ref[NUM_HIDDEN_LAYERS]).astype(o_ref.dtype)


# ---------------------------------------------------------------------------
# Parameter construction / packing
# ---------------------------------------------------------------------------
def init_params(key, input_size, hidden_size, output_size, dtype=jnp.float32):
    """PyTorch-Linear-style init: U(-1/sqrt(fan_in), 1/sqrt(fan_in)).

    Returns a list of (W, b) with W shaped (in, out) and b shaped (out,),
    both float32 (the "logical" PyTorch-equivalent parameters).
    """
    sizes = ([(input_size, hidden_size)]
             + [(hidden_size, hidden_size)] * (NUM_HIDDEN_LAYERS - 1)
             + [(hidden_size, output_size)])
    params = []
    for fan_in, fan_out in sizes:
        key, kw, kb = jax.random.split(key, 3)
        bound = 1.0 / (fan_in ** 0.5)
        w = jax.random.uniform(kw, (fan_in, fan_out), dtype, -bound, bound)
        b = jax.random.uniform(kb, (fan_out,), dtype, -bound, bound)
        params.append((w, b))
    return params


def pack_params(params, pad=PAD):
    """Zero-pad every layer to (pad, pad) and stack.

    Weights -> (L, pad, pad) bf16 ; biases -> (L, 1, pad) f32.
    Padding is exactly zero so padded lanes contribute nothing.
    """
    w_list, b_list = [], []
    for w, b in params:
        fan_in, fan_out = w.shape
        assert fan_in <= pad and fan_out <= pad, "layer too wide for PAD"
        wp = jnp.pad(w.astype(jnp.bfloat16),
                     ((0, pad - fan_in), (0, pad - fan_out)))
        bp_ = jnp.pad(b.astype(jnp.float32), ((0, pad - fan_out),))
        w_list.append(wp)
        b_list.append(bp_[None, :])
    return jnp.stack(w_list, axis=0), jnp.stack(b_list, axis=0)


# ---------------------------------------------------------------------------
# Wrapper
# ---------------------------------------------------------------------------
def _round_up(n, m):
    return ((n + m - 1) // m) * m


@functools.partial(jax.jit, static_argnames=("output_size", "batch_block"))
def bnn_forward(x, w_stacked, b_stacked, output_size, batch_block=None):
    """x: (batch, input_size, 1) -> (batch, output_size) float32."""
    x2d = jnp.squeeze(x, axis=-1)                            # (B, F) like PyTorch
    batch, feat = x2d.shape

    # --- choose the batch tile -------------------------------------------
    bp = _round_up(batch, 8)                                 # sublane multiple
    if batch_block is None:
        if bp < 256:
            tb = bp                              # single block: min overhead
        elif bp <= 4096:
            tb = _round_up(pl.cdiv(bp, 2), 8)    # 2 blocks: both v7x TCs busy
        else:
            tb = 2048                            # big tiles amortize step cost
    else:
        tb = _round_up(max(int(batch_block), 8), 8)
    grid_n = pl.cdiv(bp, tb)
    bp = grid_n * tb                             # pad batch up: no truncation

    # --- padded bf16 input (single fused pad, half the input DMA bytes) ---
    xp = jnp.pad(x2d.astype(jnp.bfloat16),
                 ((0, bp - batch), (0, PAD - feat)))

    out_padded = pl.pallas_call(
        bnn_kernel,
        out_shape=jax.ShapeDtypeStruct((bp, PAD), jnp.float32),
        grid=(grid_n,),
        in_specs=[
            pl.BlockSpec((tb, PAD), lambda i: (i, 0)),                    # x
            pl.BlockSpec((NUM_LAYERS, PAD, PAD), lambda i: (0, 0, 0)),    # W stack
            pl.BlockSpec((NUM_LAYERS, 1, PAD), lambda i: (0, 0, 0)),      # b stack
        ],
        out_specs=pl.BlockSpec((tb, PAD), lambda i: (i, 0)),
        compiler_params=pltpu.CompilerParams(
            dimension_semantics=("parallel",)),
    )(xp, w_stacked, b_stacked)

    return out_padded[:batch, :output_size]


# ---------------------------------------------------------------------------
# Pure-JAX references
# ---------------------------------------------------------------------------
def bnn_reference_f32(x, params):
    """Exact f32 reference of the original PyTorch forward."""
    h = jnp.squeeze(x, axis=-1).astype(jnp.float32)
    for i, (w, b) in enumerate(params):
        h = h @ w + b
        if i < NUM_HIDDEN_LAYERS:
            h = jnp.maximum(h, 0.0)
    return h


def bnn_reference_mixed(x, params):
    """Emulates the kernel's mixed precision (bf16 operands/activations,
    f32 accumulation + bias)."""
    h = jnp.squeeze(x, axis=-1).astype(jnp.bfloat16)
    for i, (w, b) in enumerate(params):
        acc = jnp.dot(h, w.astype(jnp.bfloat16),
                      preferred_element_type=jnp.float32) + b
        if i < NUM_HIDDEN_LAYERS:
            h = jnp.maximum(acc, 0.0).astype(jnp.bfloat16)
        else:
            h = acc
    return h


# TODO(synk): the Pyro `model`/`guide` methods (probabilistic priors, SVI) have
# no Pallas equivalent and are intentionally not implemented; only the
# deterministic forward pass is ported.

if __name__ == "__main__":
    # Small shapes consistent with the module's forward:
    # x: (batch, input_size, 1) -> squeeze(-1) -> (batch, input_size)
    batch, input_size, hidden_size, output_size = 8, 16, 32, 10

    key = jax.random.PRNGKey(0)
    kx, kp = jax.random.split(key)
    x = jax.random.normal(kx, (batch, input_size, 1), dtype=jnp.float32)

    params = init_params(kp, input_size, hidden_size, output_size)
    w_stacked, b_stacked = pack_params(params)

    out = bnn_forward(x, w_stacked, b_stacked, output_size)
    out = jax.block_until_ready(out)
    assert out.shape == (batch, output_size)

    # Tight check against a same-math (bf16-operand, f32-accum) reference.
    ref_mixed = bnn_reference_mixed(x, params)
    assert jnp.allclose(out, ref_mixed, atol=1e-4, rtol=1e-4), (
        "mismatch vs mixed-precision reference: max |diff| = "
        f"{float(jnp.max(jnp.abs(out - ref_mixed)))}")

    # Looser semantic check against the full-f32 PyTorch-equivalent reference
    # (bf16 weights/activations introduce small rounding).
    ref_f32 = bnn_reference_f32(x, params)
    assert jnp.allclose(out, ref_f32, atol=2e-2, rtol=2e-2), (
        "mismatch vs f32 reference: max |diff| = "
        f"{float(jnp.max(jnp.abs(out - ref_f32)))}")

    # Exercise the tiled path too (user-supplied batch_block that does NOT
    # divide the batch): must still match thanks to cdiv + padding.
    batch2 = 40
    kx2 = jax.random.PRNGKey(1)
    x2 = jax.random.normal(kx2, (batch2, input_size, 1), dtype=jnp.float32)
    out2 = jax.block_until_ready(
        bnn_forward(x2, w_stacked, b_stacked, output_size, batch_block=16))
    ref2 = bnn_reference_mixed(x2, params)
    assert out2.shape == (batch2, output_size)
    assert jnp.allclose(out2, ref2, atol=1e-4, rtol=1e-4), (
        "tiled-path mismatch: max |diff| = "
        f"{float(jnp.max(jnp.abs(out2 - ref2)))}")

    print("KERNEL_OK")
</pallas_src>

<mosaic_0001>
module attributes {stable_mosaic.version = 11 : i64} {
  func.func @bnn_kernel(%arg0: i32, %arg1: memref<8x128xbf16, #tpu.memory_space<vmem>>, %arg2: memref<11x128x128xbf16, #tpu.memory_space<vmem>>, %arg3: memref<11x1x128xf32, #tpu.memory_space<vmem>>, %arg4: memref<8x128xf32, #tpu.memory_space<vmem>>) attributes {dimension_semantics = [#tpu.dimension_semantics<parallel>], iteration_bounds = array<i64: 1>, scalar_prefetch = 0 : i64, scratch_operands = 0 : i64, tpu.core_type = #tpu.core_type<tc>, window_params = [{transform_indices = @transform_0, window_bounds = array<i64: 8, 128>}, {pipeline_mode = #tpu.pipeline_mode<synchronous>, transform_indices = @transform_1, window_bounds = array<i64: 11, 128, 128>}, {pipeline_mode = #tpu.pipeline_mode<synchronous>, transform_indices = @transform_2, window_bounds = array<i64: 11, 1, 128>}, {transform_indices = @transform_3, window_bounds = array<i64: 8, 128>}]} {
    %c0 = arith.constant 0 : index
    %c0_0 = arith.constant 0 : index
    %0 = vector.load %arg1[%c0, %c0_0] : memref<8x128xbf16, #tpu.memory_space<vmem>>, vector<8x128xbf16>
    %c0_1 = arith.constant 0 : index
    %c0_2 = arith.constant 0 : index
    %c0_3 = arith.constant 0 : index
    %1 = vector.load %arg2[%c0_1, %c0_2, %c0_3] : memref<11x128x128xbf16, #tpu.memory_space<vmem>>, vector<1x128x128xbf16>
    %2 = vector.shape_cast %1 : vector<1x128x128xbf16> to vector<128x128xbf16>
    %cst = arith.constant dense<0.000000e+00> : vector<8x128xf32>
    %3 = tpu.matmul %0, %2, %cst {dimension_numbers = #tpu.dot_dimension_numbers<[1], [0], [0], [1], [0, 0, 1, 1], [], []>} : vector<8x128xbf16>, vector<128x128xbf16>, vector<8x128xf32> -> vector<8x128xf32>
    %c0_4 = arith.constant 0 : index
    %c0_5 = arith.constant 0 : index
    %c0_6 = arith.constant 0 : index
    %4 = vector.load %arg3[%c0_4, %c0_5, %c0_6] : memref<11x1x128xf32, #tpu.memory_space<vmem>>, vector<1x1x128xf32>
    %5 = vector.shape_cast %4 : vector<1x1x128xf32> to vector<1x128xf32>
    %6 = vector.broadcast %5 : vector<1x128xf32> to vector<8x128xf32>
    %7 = arith.addf %3, %6 : vector<8x128xf32>
    %8 = arith.truncf %7 : vector<8x128xf32> to vector<8x128xbf16>
    %cst_7 = arith.constant 0.000000e+00 : bf16
    %9 = vector.broadcast %cst_7 : bf16 to vector<8x128xbf16>
    %10 = arith.maximumf %8, %9 : vector<8x128xbf16>
    %c1 = arith.constant 1 : index
    %c0_8 = arith.constant 0 : index
    %c0_9 = arith.constant 0 : index
    %11 = vector.load %arg2[%c1, %c0_8, %c0_9] : memref<11x128x128xbf16, #tpu.memory_space<vmem>>, vector<1x128x128xbf16>
    %12 = vector.shape_cast %11 : vector<1x128x128xbf16> to vector<128x128xbf16>
    %cst_10 = arith.constant dense<0.000000e+00> : vector<8x128xf32>
    %13 = tpu.matmul %10, %12, %cst_10 {dimension_numbers = #tpu.dot_dimension_numbers<[1], [0], [0], [1], [0, 0, 1, 1], [], []>} : vector<8x128xbf16>, vector<128x128xbf16>, vector<8x128xf32> -> vector<8x128xf32>
    %c1_11 = arith.constant 1 : index
    %c0_12 = arith.constant 0 : index
    %c0_13 = arith.constant 0 : index
    %14 = vector.load %arg3[%c1_11, %c0_12, %c0_13] : memref<11x1x128xf32, #tpu.memory_space<vmem>>, vector<1x1x128xf32>
    %15 = vector.shape_cast %14 : vector<1x1x128xf32> to vector<1x128xf32>
    %16 = vector.broadcast %15 : vector<1x128xf32> to vector<8x128xf32>
    %17 = arith.addf %13, %16 : vector<8x128xf32>
    %18 = arith.truncf %17 : vector<8x128xf32> to vector<8x128xbf16>
    %cst_14 = arith.constant 0.000000e+00 : bf16
    %19 = vector.broadcast %cst_14 : bf16 to vector<8x128xbf16>
    %20 = arith.maximumf %18, %19 : vector<8x128xbf16>
    %c2 = arith.constant 2 : index
    %c0_15 = arith.constant 0 : index
    %c0_16 = arith.constant 0 : index
    %21 = vector.load %arg2[%c2, %c0_15, %c0_16] : memref<11x128x128xbf16, #tpu.memory_space<vmem>>, vector<1x128x128xbf16>
    %22 = vector.shape_cast %21 : vector<1x128x128xbf16> to vector<128x128xbf16>
    %cst_17 = arith.constant dense<0.000000e+00> : vector<8x128xf32>
    %23 = tpu.matmul %20, %22, %cst_17 {dimension_numbers = #tpu.dot_dimension_numbers<[1], [0], [0], [1], [0, 0, 1, 1], [], []>} : vector<8x128xbf16>, vector<128x128xbf16>, vector<8x128xf32> -> vector<8x128xf32>
    %c2_18 = arith.constant 2 : index
    %c0_19 = arith.constant 0 : index
    %c0_20 = arith.constant 0 : index
    %24 = vector.load %arg3[%c2_18, %c0_19, %c0_20] : memref<11x1x128xf32, #tpu.memory_space<vmem>>, vector<1x1x128xf32>
    %25 = vector.shape_cast %24 : vector<1x1x128xf32> to vector<1x128xf32>
    %26 = vector.broadcast %25 : vector<1x128xf32> to vector<8x128xf32>
    %27 = arith.addf %23, %26 : vector<8x128xf32>
    %28 = arith.truncf %27 : vector<8x128xf32> to vector<8x128xbf16>
    %cst_21 = arith.constant 0.000000e+00 : bf16
    %29 = vector.broadcast %cst_21 : bf16 to vector<8x128xbf16>
    %30 = arith.maximumf %28, %29 : vector<8x128xbf16>
    %c3 = arith.constant 3 : index
    %c0_22 = arith.constant 0 : index
    %c0_23 = arith.constant 0 : index
    %31 = vector.load %arg2[%c3, %c0_22, %c0_23] : memref<11x128x128xbf16, #tpu.memory_space<vmem>>, vector<1x128x128xbf16>
    %32 = vector.shape_cast %31 : vector<1x128x128xbf16> to vector<128x128xbf16>
    %cst_24 = arith.constant dense<0.000000e+00> : vector<8x128xf32>
    %33 = tpu.matmul %30, %32, %cst_24 {dimension_numbers = #tpu.dot_dimension_numbers<[1], [0], [0], [1], [0, 0, 1, 1], [], []>} : vector<8x128xbf16>, vector<128x128xbf16>, vector<8x128xf32> -> vector<8x128xf32>
    %c3_25 = arith.constant 3 : index
    %c0_26 = arith.constant 0 : index
    %c0_27 = arith.constant 0 : index
    %34 = vector.load %arg3[%c3_25, %c0_26, %c0_27] : memref<11x1x128xf32, #tpu.memory_space<vmem>>, vector<1x1x128xf32>
    %35 = vector.shape_cast %34 : vector<1x1x128xf32> to vector<1x128xf32>
    %36 = vector.broadcast %35 : vector<1x128xf32> to vector<8x128xf32>
    %37 = arith.addf %33, %36 : vector<8x128xf32>
    %38 = arith.truncf %37 : vector<8x128xf32> to vector<8x128xbf16>
    %cst_28 = arith.constant 0.000000e+00 : bf16
    %39 = vector.broadcast %cst_28 : bf16 to vector<8x128xbf16>
    %40 = arith.maximumf %38, %39 : vector<8x128xbf16>
    %c4 = arith.constant 4 : index
    %c0_29 = arith.constant 0 : index
    %c0_30 = arith.constant 0 : index
    %41 = vector.load %arg2[%c4, %c0_29, %c0_30] : memref<11x128x128xbf16, #tpu.memory_space<vmem>>, vector<1x128x128xbf16>
    %42 = vector.shape_cast %41 : vector<1x128x128xbf16> to vector<128x128xbf16>
    %cst_31 = arith.constant dense<0.000000e+00> : vector<8x128xf32>
    %43 = tpu.matmul %40, %42, %cst_31 {dimension_numbers = #tpu.dot_dimension_numbers<[1], [0], [0], [1], [0, 0, 1, 1], [], []>} : vector<8x128xbf16>, vector<128x128xbf16>, vector<8x128xf32> -> vector<8x128xf32>
    %c4_32 = arith.constant 4 : index
    %c0_33 = arith.constant 0 : index
    %c0_34 = arith.constant 0 : index
    %44 = vector.load %arg3[%c4_32, %c0_33, %c0_34] : memref<11x1x128xf32, #tpu.memory_space<vmem>>, vector<1x1x128xf32>
    %45 = vector.shape_cast %44 : vector<1x1x128xf32> to vector<1x128xf32>
    %46 = vector.broadcast %45 : vector<1x128xf32> to vector<8x128xf32>
    %47 = arith.addf %43, %46 : vector<8x128xf32>
    %48 = arith.truncf %47 : vector<8x128xf32> to vector<8x128xbf16>
    %cst_35 = arith.constant 0.000000e+00 : bf16
    %49 = vector.broadcast %cst_35 : bf16 to vector<8x128xbf16>
    %50 = arith.maximumf %48, %49 : vector<8x128xbf16>
    %c5 = arith.constant 5 : index
    %c0_36 = arith.constant 0 : index
    %c0_37 = arith.constant 0 : index
    %51 = vector.load %arg2[%c5, %c0_36, %c0_37] : memref<11x128x128xbf16, #tpu.memory_space<vmem>>, vector<1x128x128xbf16>
    %52 = vector.shape_cast %51 : vector<1x128x128xbf16> to vector<128x128xbf16>
    %cst_38 = arith.constant dense<0.000000e+00> : vector<8x128xf32>
    %53 = tpu.matmul %50, %52, %cst_38 {dimension_numbers = #tpu.dot_dimension_numbers<[1], [0], [0], [1], [0, 0, 1, 1], [], []>} : vector<8x128xbf16>, vector<128x128xbf16>, vector<8x128xf32> -> vector<8x128xf32>
    %c5_39 = arith.constant 5 : index
    %c0_40 = arith.constant 0 : index
    %c0_41 = arith.constant 0 : index
    %54 = vector.load %arg3[%c5_39, %c0_40, %c0_41] : memref<11x1x128xf32, #tpu.memory_space<vmem>>, vector<1x1x128xf32>
    %55 = vector.shape_cast %54 : vector<1x1x128xf32> to vector<1x128xf32>
    %56 = vector.broadcast %55 : vector<1x128xf32> to vector<8x128xf32>
    %57 = arith.addf %53, %56 : vector<8x128xf32>
    %58 = arith.truncf %57 : vector<8x128xf32> to vector<8x128xbf16>
    %cst_42 = arith.constant 0.000000e+00 : bf16
    %59 = vector.broadcast %cst_42 : bf16 to vector<8x128xbf16>
    %60 = arith.maximumf %58, %59 : vector<8x128xbf16>
    %c6 = arith.constant 6 : index
    %c0_43 = arith.constant 0 : index
    %c0_44 = arith.constant 0 : index
    %61 = vector.load %arg2[%c6, %c0_43, %c0_44] : memref<11x128x128xbf16, #tpu.memory_space<vmem>>, vector<1x128x128xbf16>
    %62 = vector.shape_cast %61 : vector<1x128x128xbf16> to vector<128x128xbf16>
    %cst_45 = arith.constant dense<0.000000e+00> : vector<8x128xf32>
    %63 = tpu.matmul %60, %62, %cst_45 {dimension_numbers = #tpu.dot_dimension_numbers<[1], [0], [0], [1], [0, 0, 1, 1], [], []>} : vector<8x128xbf16>, vector<128x128xbf16>, vector<8x128xf32> -> vector<8x128xf32>
    %c6_46 = arith.constant 6 : index
    %c0_47 = arith.constant 0 : index
    %c0_48 = arith.constant 0 : index
    %64 = vector.load %arg3[%c6_46, %c0_47, %c0_48] : memref<11x1x128xf32, #tpu.memory_space<vmem>>, vector<1x1x128xf32>
    %65 = vector.shape_cast %64 : vector<1x1x128xf32> to vector<1x128xf32>
    %66 = vector.broadcast %65 : vector<1x128xf32> to vector<8x128xf32>
    %67 = arith.addf %63, %66 : vector<8x128xf32>
    %68 = arith.truncf %67 : vector<8x128xf32> to vector<8x128xbf16>
    %cst_49 = arith.constant 0.000000e+00 : bf16
    %69 = vector.broadcast %cst_49 : bf16 to vector<8x128xbf16>
    %70 = arith.maximumf %68, %69 : vector<8x128xbf16>
    %c7 = arith.constant 7 : index
    %c0_50 = arith.constant 0 : index
    %c0_51 = arith.constant 0 : index
    %71 = vector.load %arg2[%c7, %c0_50, %c0_51] : memref<11x128x128xbf16, #tpu.memory_space<vmem>>, vector<1x128x128xbf16>
    %72 = vector.shape_cast %71 : vector<1x128x128xbf16> to vector<128x128xbf16>
    %cst_52 = arith.constant dense<0.000000e+00> : vector<8x128xf32>
    %73 = tpu.matmul %70, %72, %cst_52 {dimension_numbers = #tpu.dot_dimension_numbers<[1], [0], [0], [1], [0, 0, 1, 1], [], []>} : vector<8x128xbf16>, vector<128x128xbf16>, vector<8x128xf32> -> vector<8x128xf32>
    %c7_53 = arith.constant 7 : index
    %c0_54 = arith.constant 0 : index
    %c0_55 = arith.constant 0 : index
    %74 = vector.load %arg3[%c7_53, %c0_54, %c0_55] : memref<11x1x128xf32, #tpu.memory_space<vmem>>, vector<1x1x128xf32>
    %75 = vector.shape_cast %74 : vector<1x1x128xf32> to vector<1x128xf32>
    %76 = vector.broadcast %75 : vector<1x128xf32> to vector<8x128xf32>
    %77 = arith.addf %73, %76 : vector<8x128xf32>
    %78 = arith.truncf %77 : vector<8x128xf32> to vector<8x128xbf16>
    %cst_56 = arith.constant 0.000000e+00 : bf16
    %79 = vector.broadcast %cst_56 : bf16 to vector<8x128xbf16>
    %80 = arith.maximumf %78, %79 : vector<8x128xbf16>
    %c8 = arith.constant 8 : index
    %c0_57 = arith.constant 0 : index
    %c0_58 = arith.constant 0 : index
    %81 = vector.load %arg2[%c8, %c0_57, %c0_58] : memref<11x128x128xbf16, #tpu.memory_space<vmem>>, vector<1x128x128xbf16>
    %82 = vector.shape_cast %81 : vector<1x128x128xbf16> to vector<128x128xbf16>
    %cst_59 = arith.constant dense<0.000000e+00> : vector<8x128xf32>
    %83 = tpu.matmul %80, %82, %cst_59 {dimension_numbers = #tpu.dot_dimension_numbers<[1], [0], [0], [1], [0, 0, 1, 1], [], []>} : vector<8x128xbf16>, vector<128x128xbf16>, vector<8x128xf32> -> vector<8x128xf32>
    %c8_60 = arith.constant 8 : index
    %c0_61 = arith.constant 0 : index
    %c0_62 = arith.constant 0 : index
    %84 = vector.load %arg3[%c8_60, %c0_61, %c0_62] : memref<11x1x128xf32, #tpu.memory_space<vmem>>, vector<1x1x128xf32>
    %85 = vector.shape_cast %84 : vector<1x1x128xf32> to vector<1x128xf32>
    %86 = vector.broadcast %85 : vector<1x128xf32> to vector<8x128xf32>
    %87 = arith.addf %83, %86 : vector<8x128xf32>
    %88 = arith.truncf %87 : vector<8x128xf32> to vector<8x128xbf16>
    %cst_63 = arith.constant 0.000000e+00 : bf16
    %89 = vector.broadcast %cst_63 : bf16 to vector<8x128xbf16>
    %90 = arith.maximumf %88, %89 : vector<8x128xbf16>
    %c9 = arith.constant 9 : index
    %c0_64 = arith.constant 0 : index
    %c0_65 = arith.constant 0 : index
    %91 = vector.load %arg2[%c9, %c0_64, %c0_65] : memref<11x128x128xbf16, #tpu.memory_space<vmem>>, vector<1x128x128xbf16>
    %92 = vector.shape_cast %91 : vector<1x128x128xbf16> to vector<128x128xbf16>
    %cst_66 = arith.constant dense<0.000000e+00> : vector<8x128xf32>
    %93 = tpu.matmul %90, %92, %cst_66 {dimension_numbers = #tpu.dot_dimension_numbers<[1], [0], [0], [1], [0, 0, 1, 1], [], []>} : vector<8x128xbf16>, vector<128x128xbf16>, vector<8x128xf32> -> vector<8x128xf32>
    %c9_67 = arith.constant 9 : index
    %c0_68 = arith.constant 0 : index
    %c0_69 = arith.constant 0 : index
    %94 = vector.load %arg3[%c9_67, %c0_68, %c0_69] : memref<11x1x128xf32, #tpu.memory_space<vmem>>, vector<1x1x128xf32>
    %95 = vector.shape_cast %94 : vector<1x1x128xf32> to vector<1x128xf32>
    %96 = vector.broadcast %95 : vector<1x128xf32> to vector<8x128xf32>
    %97 = arith.addf %93, %96 : vector<8x128xf32>
    %98 = arith.truncf %97 : vector<8x128xf32> to vector<8x128xbf16>
    %cst_70 = arith.constant 0.000000e+00 : bf16
    %99 = vector.broadcast %cst_70 : bf16 to vector<8x128xbf16>
    %100 = arith.maximumf %98, %99 : vector<8x128xbf16>
    %c10 = arith.constant 10 : index
    %c0_71 = arith.constant 0 : index
    %c0_72 = arith.constant 0 : index
    %101 = vector.load %arg2[%c10, %c0_71, %c0_72] : memref<11x128x128xbf16, #tpu.memory_space<vmem>>, vector<1x128x128xbf16>
    %102 = vector.shape_cast %101 : vector<1x128x128xbf16> to vector<128x128xbf16>
    %cst_73 = arith.constant dense<0.000000e+00> : vector<8x128xf32>
    %103 = tpu.matmul %100, %102, %cst_73 {dimension_numbers = #tpu.dot_dimension_numbers<[1], [0], [0], [1], [0, 0, 1, 1], [], []>} : vector<8x128xbf16>, vector<128x128xbf16>, vector<8x128xf32> -> vector<8x128xf32>
    %c10_74 = arith.constant 10 : index
    %c0_75 = arith.constant 0 : index
    %c0_76 = arith.constant 0 : index
    %104 = vector.load %arg3[%c10_74, %c0_75, %c0_76] : memref<11x1x128xf32, #tpu.memory_space<vmem>>, vector<1x1x128xf32>
    %105 = vector.shape_cast %104 : vector<1x1x128xf32> to vector<1x128xf32>
    %106 = vector.broadcast %105 : vector<1x128xf32> to vector<8x128xf32>
    %107 = arith.addf %103, %106 : vector<8x128xf32>
    %c0_77 = arith.constant 0 : index
    %c0_78 = arith.constant 0 : index
    %108 = vector.load %arg4[%c0_77, %c0_78] : memref<8x128xf32, #tpu.memory_space<vmem>>, vector<8x128xf32>
    tpu.vector_store %arg4[%c0_77, %c0_78], %107 {strides = array<i32>} : memref<8x128xf32, #tpu.memory_space<vmem>>, vector<8x128xf32>,
    return
  }
  func.func @transform_0(%arg0: i32) -> (i32, i32) {
    %c0_i32 = arith.constant 0 : i32
    %c0_i32_0 = arith.constant 0 : i32
    return %arg0, %c0_i32 : i32, i32
  }
  func.func @transform_1(%arg0: i32) -> (i32, i32, i32) {
    %c0_i32 = arith.constant 0 : i32
    %c0_i32_0 = arith.constant 0 : i32
    %c0_i32_1 = arith.constant 0 : i32
    %c0_i32_2 = arith.constant 0 : i32
    return %c0_i32, %c0_i32_0, %c0_i32_1 : i32, i32, i32
  }
  func.func @transform_2(%arg0: i32) -> (i32, i32, i32) {
    %c0_i32 = arith.constant 0 : i32
    %c0_i32_0 = arith.constant 0 : i32
    %c0_i32_1 = arith.constant 0 : i32
    %c0_i32_2 = arith.constant 0 : i32
    return %c0_i32, %c0_i32_0, %c0_i32_1 : i32, i32, i32
  }
  func.func @transform_3(%arg0: i32) -> (i32, i32) {
    %c0_i32 = arith.constant 0 : i32
    %c0_i32_0 = arith.constant 0 : i32
    return %arg0, %c0_i32 : i32, i32
  }
}

</mosaic_0001>

<bundles_post_ra>
// kernel: bnn_forward.1
= control target key start
LH: loop header
LB: loop body
LE: loop exit
PB: predicated region body
PF: predicated region fallthrough
CT: control target
= control target key end

     0   :  { %8 = vsyncpa [#allocation3], 0  ;;  %s1584_s0 = inlined_call_operand.vmem [shape: bf16[8,128], index: 0, kind: input, shape index: {}]   ;;  %s1585_s1 = inlined_call_operand.hbm [shape: bf16[11,128,128], index: 1, kind: input, shape index: {}]   ;;  %s1586_s2 = inlined_call_operand.vmem [shape: f32[11,1,128], index: 2, kind: input, shape index: {}]   ;;  %s1587_s3 = inlined_call_operand.hbm [shape: f32[8,128], index: 3, kind: output, shape index: {}]  }
   0x1   :  { %9 = vsyncpa [#allocation4], 0  ;;  %s16_s14 = sshll.u32 %s1585_s1, 4  ;;  %s1518_s15 = smov [#allocation2]   ;;  %s17_s14 = int_to_ptr.hbm [resolvable:$true] %s16_s14 }
   0x2   :  { %s18_s16 = sshll.u32 %s1518_s15, 4  ;;  %s1519_s17 = smov 64   ;;  %s19_s16 = int_to_ptr.vmem [resolvable:$true] %s18_s16 }
   0x3   :  { %s1520_s18 = smov 4  }
   0x4   :  { %24 = dma.hbm_to_vmem [thread:$0]  %s17_s14, 11264, %s19_s16, [#allocation3], %s1519_s17, %s1519_s17, %s1520_s18  }
   0x5   :  { %1514 = dma.done.wait [#allocation3], 11264  }
   0x6   :  { %1515 = vsyncadd [#allocation3], 4294956032  ;;  %v1370_v0 = vld [vmem:[#allocation2 + $0x38] sm:$0xff]  ;;  %v1369_v1 = vld [vmem:[#allocation2 + $0x30] sm:$0xff]  ;;  %s1521_s14 = smov [#allocation5]   ;;  %s991_s18 = sshll.u32 %s1587_s3, 4  ;;  %s992_s18 = int_to_ptr.hbm [resolvable:$true] %s991_s18 }
   0x7   :  { %100 = vmatpush.bf16.msra.mxu0 %v1370_v0  ;;  %v1378_v2 = vld [vmem:[#allocation2 + $0x78] sm:$0xff]  ;;  %v1368_v3 = vld [vmem:[#allocation2 + $0x28] sm:$0xff]  ;;  %v1377_v4 = vld [vmem:[#allocation2 + $0x70] sm:$0xff]  ;;  %s989_s15 = sshll.u32 %s1521_s14, 4  ;;  %s990_s15 = int_to_ptr.vmem [resolvable:$true] %s989_s15 }
   0x8   :  { %187 = vmatpush.bf16.msra.mxu1 %v1378_v2  ;;  %v1376_v5 = vld [vmem:[#allocation2 + $0x68] sm:$0xff]  ;;  %v1367_v6 = vld [vmem:[#allocation2 + $0x20] sm:$0xff]  ;;  %v1366_v8 = vld [vmem:[#allocation2 + $0x18] sm:$0xff] }
   0x9   :  { %v1375_v7 = vld [vmem:[#allocation2 + $0x60] sm:$0xff]  ;;  %v1374_v9 = vld [vmem:[#allocation2 + $0x58] sm:$0xff]  ;;  %v1365_v10 = vld [vmem:[#allocation2 + $0x10] sm:$0xff] }
   0xa   :  { %v1373_v11 = vld [vmem:[#allocation2 + $0x50] sm:$0xff]  ;;  %v1364_v12 = vld [vmem:[#allocation2 + $0x8] sm:$0xff]  ;;  %v1363_v13 = vld [vmem:[#allocation2] sm:$0xff] }
   0xb   :  { %101 = vmatpush.bf16.msra.mxu0 %v1369_v1  ;;  %v31_v14 = vld [vmem:[%s1584_s0] sm:$0xf]  ;;  %v1372_v15 = vld [vmem:[#allocation2 + $0x48] sm:$0xff]  ;;  %v1386_v17 = vld [vmem:[#allocation2 + $0xb8] sm:$0xff] }
   0xc   :  { %188 = vmatpush.bf16.msra.mxu1 %v1377_v4  ;;  %v1371_v16 = vld [vmem:[#allocation2 + $0x40] sm:$0xff]  ;;  %274 = vmatpush.bf16.msra.mxu2 %v1386_v17  ;;  %v1385_v18 = vld [vmem:[#allocation2 + $0xb0] sm:$0xff]  ;;  %v1384_v19 = vld [vmem:[#allocation2 + $0xa8] sm:$0xff] }
   0xd   :  { %v1383_v20 = vld [vmem:[#allocation2 + $0xa0] sm:$0xff]  ;;  %v1382_v21 = vld [vmem:[#allocation2 + $0x98] sm:$0xff]  ;;  %v1381_v22 = vld [vmem:[#allocation2 + $0x90] sm:$0xff] }
   0xe   :  { %v1455_v23 = vld [vmem:[%s1586_s2] ss:$0 sm:$0xff]  ;;  %v1380_v29 = vld [vmem:[#allocation2 + $0x88] sm:$0xff]  ;;  %v1394_v31 = vld [vmem:[#allocation2 + $0xf8] sm:$0xff] }
   0xf   :  { %102 = vmatpush.bf16.msra.mxu0 %v1368_v3  ;;  %v1379_v30 = vld [vmem:[#allocation2 + $0x80] sm:$0xff]  ;;  %361 = vmatpush.bf16.msra.mxu3 %v1394_v31  ;;  %v1393_v32 = vld [vmem:[#allocation2 + $0xf0] sm:$0xff]  ;;  %v1392_v33 = vld [vmem:[#allocation2 + $0xe8] sm:$0xff] }
  0x10   :  { %189 = vmatpush.bf16.msra.mxu1 %v1376_v5  ;;  %275 = vmatpush.bf16.msra.mxu2 %v1385_v18  ;;  %v1391_v34 = vld [vmem:[#allocation2 + $0xe0] sm:$0xff]  ;;  %v1390_v35 = vld [vmem:[#allocation2 + $0xd8] sm:$0xff]  ;;  %v1389_v36 = vld [vmem:[#allocation2 + $0xd0] sm:$0xff] }
  0x11   :  { %v1456_v37 = vld [vmem:[%s1586_s2 + $0x1] ss:$0 sm:$0xff]  ;;  %v1388_v43 = vld [vmem:[#allocation2 + $0xc8] sm:$0xff]  ;;  %v1402_v45 = vld [vmem:[#allocation2 + $0x138] sm:$0xff] }
  0x12   :  { %v1387_v44 = vld [vmem:[#allocation2 + $0xc0] sm:$0xff]  ;;  %v1401_v46 = vld [vmem:[#allocation2 + $0x130] sm:$0xff]  ;;  %v1400_v47 = vld [vmem:[#allocation2 + $0x128] sm:$0xff] }
  0x13   :  { %103 = vmatpush.bf16.msra.mxu0 %v1367_v6  ;;  %362 = vmatpush.bf16.msra.mxu3 %v1393_v32  ;;  %v1399_v48 = vld [vmem:[#allocation2 + $0x120] sm:$0xff]  ;;  %v1398_v49 = vld [vmem:[#allocation2 + $0x118] sm:$0xff]  ;;  %v1397_v50 = vld [vmem:[#allocation2 + $0x110] sm:$0xff] }
  0x14   :  { %190 = vmatpush.bf16.msra.mxu1 %v1375_v7  ;;  %276 = vmatpush.bf16.msra.mxu2 %v1384_v19  ;;  %v1457_v51 = vld [vmem:[%s1586_s2 + $0x2] ss:$0 sm:$0xff]  ;;  %v1396_v57 = vld [vmem:[#allocation2 + $0x108] sm:$0xff]  ;;  %v1410_v59 = vld [vmem:[#allocation2 + $0x178] sm:$0xff] }
  0x15   :  { %v1395_v58 = vld [vmem:[#allocation2 + $0x100] sm:$0xff]  ;;  %v1409_v60 = vld [vmem:[#allocation2 + $0x170] sm:$0xff]  ;;  %v1408_v61 = vld [vmem:[#allocation2 + $0x168] sm:$0xff] }
  0x16   :  { %v1407_v62 = vld [vmem:[#allocation2 + $0x160] sm:$0xff]  ;;  %v1406_v63 = vld [vmem:[#allocation2 + $0x158] sm:$0xff]  ;;  %v1405_v0 = vld [vmem:[#allocation2 + $0x150] sm:$0xff] }
  0x17   :  { %104 = vmatpush.bf16.msra.mxu0 %v1366_v8  ;;  %363 = vmatpush.bf16.msra.mxu3 %v1392_v33  ;;  %v1458_v1 = vld [vmem:[%s1586_s2 + $0x3] ss:$0 sm:$0xff]  ;;  %v1404_v7 = vld [vmem:[#allocation2 + $0x148] sm:$0xff] }
  0x18   :  { %191 = vmatpush.bf16.msra.mxu1 %v1374_v9  ;;  %277 = vmatpush.bf16.msra.mxu2 %v1383_v20  ;;  %v1403_v8 = vld [vmem:[#allocation2 + $0x140] sm:$0xff]  ;;  %v1418_v9 = vld [vmem:[#allocation2 + $0x1b8] sm:$0xff] }
  0x1b   :  { %105 = vmatpush.bf16.msra.mxu0 %v1365_v10  ;;  %364 = vmatpush.bf16.msra.mxu3 %v1391_v34  ;;  %v1417_v10 = vld [vmem:[#allocation2 + $0x1b0] sm:$0xff] }
  0x1c   :  { %192 = vmatpush.bf16.msra.mxu1 %v1373_v11  ;;  %278 = vmatpush.bf16.msra.mxu2 %v1382_v21  ;;  %v1416_v11 = vld [vmem:[#allocation2 + $0x1a8] sm:$0xff] }
  0x1d   :  { %v1412_v21 = vld [vmem:[#allocation2 + $0x188] sm:$0xff] }
  0x1f   :  { %106 = vmatpush.bf16.msra.mxu0 %v1364_v12  ;;  %365 = vmatpush.bf16.msra.mxu3 %v1390_v35  ;;  %v1415_v12 = vld [vmem:[#allocation2 + $0x1a0] sm:$0xff]  ;;  %v1420_v35 = vld [vmem:[#allocation2 + $0x1c8] sm:$0xff] }
  0x20   :  { %193 = vmatpush.bf16.msra.mxu1 %v1372_v15  ;;  %279 = vmatpush.bf16.msra.mxu2 %v1381_v22  ;;  %v1459_v15 = vld [vmem:[%s1586_s2 + $0x4] ss:$0 sm:$0xff] }
  0x21   :  { %v1411_v22 = vld [vmem:[#allocation2 + $0x180] sm:$0xff] }
  0x23   :  { %107 = vmatpush.bf16.msra.mxu0 %v1363_v13  ;;  %366 = vmatpush.bf16.msra.mxu3 %v1389_v36  ;;  %v1414_v13 = vld [vmem:[#allocation2 + $0x198] sm:$0xff]  ;;  %v1419_v36 = vld [vmem:[#allocation2 + $0x1c0] sm:$0xff] }
  0x24   :  { %194 = vmatpush.bf16.msra.mxu1 %v1371_v16  ;;  %280 = vmatpush.bf16.msra.mxu2 %v1380_v29  ;;  %v1460_v29 = vld [vmem:[%s1586_s2 + $0x5] ss:$0 sm:$0xff] }
  0x26   :  { %108 = vmatmul.bf16.vlgmr.msra.gmra.mxu0 %v31_v14  ;;  %v1413_v14 = vld [vmem:[#allocation2 + $0x190] sm:$0xff] }
  0x27   :  { %367 = vmatpush.bf16.msra.mxu3 %v1388_v43  ;;  %448 = vmatpush.bf16.msrb.mxu0 %v1402_v45  ;;  %v1461_v43 = vld [vmem:[%s1586_s2 + $0x6] ss:$0 sm:$0xff] }
  0x28   :  { %281 = vmatpush.bf16.msra.mxu2 %v1379_v30  ;;  %535 = vmatpush.bf16.msrb.mxu1 %v1410_v59 }
  0x2b   :  { %368 = vmatpush.bf16.msra.mxu3 %v1387_v44  ;;  %449 = vmatpush.bf16.msrb.mxu0 %v1401_v46 }
  0x2c   :  { %536 = vmatpush.bf16.msrb.mxu1 %v1409_v60  ;;  %622 = vmatpush.bf16.msrb.mxu2 %v1418_v9 }
  0x2f   :  { %450 = vmatpush.bf16.msrb.mxu0 %v1400_v47 }
  0x30   :  { %537 = vmatpush.bf16.msrb.mxu1 %v1408_v61  ;;  %623 = vmatpush.bf16.msrb.mxu2 %v1417_v10 }
  0x33   :  { %451 = vmatpush.bf16.msrb.mxu0 %v1399_v48 }
  0x34   :  { %538 = vmatpush.bf16.msrb.mxu1 %v1407_v62  ;;  %624 = vmatpush.bf16.msrb.mxu2 %v1416_v11 }
  0x37   :  { %452 = vmatpush.bf16.msrb.mxu0 %v1398_v49  ;;  %v1428_v49 = vld [vmem:[#allocation2 + $0x208] sm:$0xff] }
  0x38   :  { %539 = vmatpush.bf16.msrb.mxu1 %v1406_v63  ;;  %625 = vmatpush.bf16.msrb.mxu2 %v1415_v12  ;;  %v1436_v63 = vld [vmem:[#allocation2 + $0x248] sm:$0xff] }
  0x3b   :  { %453 = vmatpush.bf16.msrb.mxu0 %v1397_v50  ;;  %v1427_v50 = vld [vmem:[#allocation2 + $0x200] sm:$0xff] }
  0x3c   :  { %540 = vmatpush.bf16.msrb.mxu1 %v1405_v0  ;;  %626 = vmatpush.bf16.msrb.mxu2 %v1414_v13  ;;  %v1435_v0 = vld [vmem:[#allocation2 + $0x240] sm:$0xff]  ;;  %v1444_v13 = vld [vmem:[#allocation2 + $0x288] sm:$0xff] }
  0x3f   :  { %454 = vmatpush.bf16.msrb.mxu0 %v1396_v57  ;;  %v1462_v57 = vld [vmem:[%s1586_s2 + $0x7] ss:$0 sm:$0xff] }
  0x40   :  { %541 = vmatpush.bf16.msrb.mxu1 %v1404_v7  ;;  %627 = vmatpush.bf16.msrb.mxu2 %v1413_v14  ;;  %v1463_v7 = vld [vmem:[%s1586_s2 + $0x8] ss:$0 sm:$0xff]  ;;  %v1443_v14 = vld [vmem:[#allocation2 + $0x280] sm:$0xff] }
  0x43   :  { %455 = vmatpush.bf16.msrb.mxu0 %v1395_v58 }
  0x44   :  { %542 = vmatpush.bf16.msrb.mxu1 %v1403_v8  ;;  %628 = vmatpush.bf16.msrb.mxu2 %v1412_v21  ;;  %v1465_v21 = vld [vmem:[%s1586_s2 + $0xa] ss:$0 sm:$0xff] }
  0x48   :  { %629 = vmatpush.bf16.msrb.mxu2 %v1411_v22 }
  0xa3   :  { %v109_v24 = vpop.f32.mrf.mxu0 }
  0xa4   :  { %v110_v25 = vadd.f32 %v1455_v23, %v109_v24  ;;  %v1426_v23 = vld [vmem:[#allocation2 + $0x1f8] sm:$0xff]  ;;  %v1425_v24 = vld [vmem:[#allocation2 + $0x1f0] sm:$0xff] }
  0xa5   :  { %709 = vmatpush.bf16.msrb.mxu3 %v1426_v23 }
  0xa6   :  { %v115_v26 = vmax.f32 %v110_v25, 0.0  ;;  %v1424_v25 = vld [vmem:[#allocation2 + $0x1e8] sm:$0xff] }
  0xa8   :  { %v116_v27 = vpack.c.bf16 %v115_v26, %v115_v26  ;;  %v1423_v26 = vld [vmem:[#allocation2 + $0x1e0] sm:$0xff] }
  0xa9   :  { %710 = vmatpush.bf16.msrb.mxu3 %v1425_v24 }
  0xaa   :  { %195 = vmatmul.bf16.vlgmr.msra.gmra.mxu1 %v116_v27  ;;  %v1422_v27 = vld [vmem:[#allocation2 + $0x1d8] sm:$0xff] }
  0xab   :  { %v111_v28 = vpop.f32.mrf.mxu0 }
  0xac   :  { %v1421_v28 = vld [vmem:[#allocation2 + $0x1d0] sm:$0xff] }
  0xad   :  { %711 = vmatpush.bf16.msrb.mxu3 %v1424_v25 }
  0xb1   :  { %712 = vmatpush.bf16.msrb.mxu3 %v1423_v26 }
  0xb5   :  { %713 = vmatpush.bf16.msrb.mxu3 %v1422_v27 }
  0xb9   :  { %714 = vmatpush.bf16.msrb.mxu3 %v1421_v28 }
  0xbd   :  { %715 = vmatpush.bf16.msrb.mxu3 %v1420_v35 }
  0xc1   :  { %716 = vmatpush.bf16.msrb.mxu3 %v1419_v36 }
 0x127   :  { %v196_v38 = vpop.f32.mrf.mxu1 }
 0x128   :  { %v197_v39 = vadd.f32 %v1456_v37, %v196_v38  ;;  %v1434_v37 = vld [vmem:[#allocation2 + $0x238] sm:$0xff]  ;;  %v1433_v38 = vld [vmem:[#allocation2 + $0x230] sm:$0xff] }
 0x129   :  { %796 = vmatpush.bf16.msra.mxu0 %v1434_v37 }
 0x12a   :  { %v202_v40 = vmax.f32 %v197_v39, 0.0  ;;  %v1432_v39 = vld [vmem:[#allocation2 + $0x228] sm:$0xff] }
 0x12c   :  { %v203_v41 = vpack.c.bf16 %v202_v40, %v202_v40  ;;  %v1431_v40 = vld [vmem:[#allocation2 + $0x220] sm:$0xff] }
 0x12d   :  { %797 = vmatpush.bf16.msra.mxu0 %v1433_v38 }
 0x12e   :  { %282 = vmatmul.bf16.vlgmr.msra.gmra.mxu2 %v203_v41  ;;  %v1430_v41 = vld [vmem:[#allocation2 + $0x218] sm:$0xff] }
 0x12f   :  { %v198_v42 = vpop.f32.mrf.mxu1 }
 0x130   :  { %v1429_v42 = vld [vmem:[#allocation2 + $0x210] sm:$0xff] }
 0x131   :  { %798 = vmatpush.bf16.msra.mxu0 %v1432_v39 }
 0x135   :  { %799 = vmatpush.bf16.msra.mxu0 %v1431_v40 }
 0x139   :  { %800 = vmatpush.bf16.msra.mxu0 %v1430_v41 }
 0x13d   :  { %801 = vmatpush.bf16.msra.mxu0 %v1429_v42 }
 0x141   :  { %802 = vmatpush.bf16.msra.mxu0 %v1428_v49 }
 0x145   :  { %803 = vmatpush.bf16.msra.mxu0 %v1427_v50 }
 0x1b1   :  { %v283_v52 = vpop.f32.mrf.mxu2 }
 0x1b2   :  { %v284_v53 = vadd.f32 %v1457_v51, %v283_v52  ;;  %v1442_v51 = vld [vmem:[#allocation2 + $0x278] sm:$0xff]  ;;  %v1441_v52 = vld [vmem:[#allocation2 + $0x270] sm:$0xff] }
 0x1b3   :  { %883 = vmatpush.bf16.msra.mxu1 %v1442_v51 }
 0x1b4   :  { %v289_v54 = vmax.f32 %v284_v53, 0.0  ;;  %v1440_v53 = vld [vmem:[#allocation2 + $0x268] sm:$0xff] }
 0x1b6   :  { %v290_v55 = vpack.c.bf16 %v289_v54, %v289_v54  ;;  %v1439_v54 = vld [vmem:[#allocation2 + $0x260] sm:$0xff] }
 0x1b7   :  { %884 = vmatpush.bf16.msra.mxu1 %v1441_v52 }
 0x1b8   :  { %369 = vmatmul.bf16.vlgmr.msra.gmra.mxu3 %v290_v55  ;;  %v1438_v55 = vld [vmem:[#allocation2 + $0x258] sm:$0xff] }
 0x1b9   :  { %v285_v56 = vpop.f32.mrf.mxu2 }
 0x1ba   :  { %v1437_v56 = vld [vmem:[#allocation2 + $0x250] sm:$0xff] }
 0x1bb   :  { %885 = vmatpush.bf16.msra.mxu1 %v1440_v53 }
 0x1bf   :  { %886 = vmatpush.bf16.msra.mxu1 %v1439_v54 }
 0x1c3   :  { %887 = vmatpush.bf16.msra.mxu1 %v1438_v55 }
 0x1c7   :  { %888 = vmatpush.bf16.msra.mxu1 %v1437_v56 }
 0x1cb   :  { %889 = vmatpush.bf16.msra.mxu1 %v1436_v63 }
 0x1cf   :  { %890 = vmatpush.bf16.msra.mxu1 %v1435_v0 }
 0x23b   :  { %v370_v2 = vpop.f32.mrf.mxu3 }
 0x23c   :  { %v371_v3 = vadd.f32 %v1458_v1, %v370_v2  ;;  %v1450_v1 = vld [vmem:[#allocation2 + $0x2b8] sm:$0xff]  ;;  %v1449_v2 = vld [vmem:[#allocation2 + $0x2b0] sm:$0xff] }
 0x23d   :  { %970 = vmatpush.bf16.msra.mxu2 %v1450_v1 }
 0x23e   :  { %v376_v4 = vmax.f32 %v371_v3, 0.0  ;;  %v1448_v3 = vld [vmem:[#allocation2 + $0x2a8] sm:$0xff] }
 0x240   :  { %v377_v5 = vpack.c.bf16 %v376_v4, %v376_v4  ;;  %v1447_v4 = vld [vmem:[#allocation2 + $0x2a0] sm:$0xff] }
 0x241   :  { %971 = vmatpush.bf16.msra.mxu2 %v1449_v2 }
 0x242   :  { %456 = vmatmul.bf16.vlgmr.msrb.gmra.mxu0 %v377_v5  ;;  %v1446_v5 = vld [vmem:[#allocation2 + $0x298] sm:$0xff] }
 0x243   :  { %v372_v6 = vpop.f32.mrf.mxu3 }
 0x244   :  { %v1445_v6 = vld [vmem:[#allocation2 + $0x290] sm:$0xff] }
 0x245   :  { %972 = vmatpush.bf16.msra.mxu2 %v1448_v3 }
 0x249   :  { %973 = vmatpush.bf16.msra.mxu2 %v1447_v4 }
 0x24d   :  { %974 = vmatpush.bf16.msra.mxu2 %v1446_v5 }
 0x251   :  { %975 = vmatpush.bf16.msra.mxu2 %v1445_v6 }
 0x255   :  { %976 = vmatpush.bf16.msra.mxu2 %v1444_v13 }
 0x259   :  { %977 = vmatpush.bf16.msra.mxu2 %v1443_v14 }
 0x2bf   :  { %v457_v16 = vpop.f32.mrf.mxu0 }
 0x2c0   :  { %v458_v17 = vadd.f32 %v1459_v15, %v457_v16  ;;  %v1464_v15 = vld [vmem:[%s1586_s2 + $0x9] ss:$0 sm:$0xff] }
 0x2c2   :  { %v463_v18 = vmax.f32 %v458_v17, 0.0 }
 0x2c4   :  { %v464_v19 = vpack.c.bf16 %v463_v18, %v463_v18 }
 0x2c6   :  { %543 = vmatmul.bf16.vlgmr.msrb.gmra.mxu1 %v464_v19 }
 0x2c7   :  { %v459_v20 = vpop.f32.mrf.mxu0 }
 0x343   :  { %v544_v30 = vpop.f32.mrf.mxu1 }
 0x344   :  { %v545_v31 = vadd.f32 %v1460_v29, %v544_v30 }
 0x346   :  { %v550_v32 = vmax.f32 %v545_v31, 0.0 }
 0x348   :  { %v551_v33 = vpack.c.bf16 %v550_v32, %v550_v32 }
 0x34a   :  { %630 = vmatmul.bf16.vlgmr.msrb.gmra.mxu2 %v551_v33 }
 0x34b   :  { %v546_v34 = vpop.f32.mrf.mxu1 }
 0x3cd   :  { %v631_v44 = vpop.f32.mrf.mxu2 }
 0x3ce   :  { %v632_v45 = vadd.f32 %v1461_v43, %v631_v44 }
 0x3d0   :  { %v637_v46 = vmax.f32 %v632_v45, 0.0 }
 0x3d2   :  { %v638_v47 = vpack.c.bf16 %v637_v46, %v637_v46 }
 0x3d4   :  { %717 = vmatmul.bf16.vlgmr.msrb.gmra.mxu3 %v638_v47 }
 0x3d5   :  { %v633_v48 = vpop.f32.mrf.mxu2 }
 0x457   :  { %v718_v58 = vpop.f32.mrf.mxu3 }
 0x458   :  { %v719_v59 = vadd.f32 %v1462_v57, %v718_v58 }
 0x45a   :  { %v724_v60 = vmax.f32 %v719_v59, 0.0 }
 0x45c   :  { %v725_v61 = vpack.c.bf16 %v724_v60, %v724_v60 }
 0x45e   :  { %804 = vmatmul.bf16.vlgmr.msra.gmra.mxu0 %v725_v61 }
 0x45f   :  { %v720_v62 = vpop.f32.mrf.mxu3 }
 0x4db   :  { %v805_v8 = vpop.f32.mrf.mxu0 }
 0x4dc   :  { %v806_v9 = vadd.f32 %v1463_v7, %v805_v8 }
 0x4de   :  { %v811_v10 = vmax.f32 %v806_v9, 0.0 }
 0x4e0   :  { %v812_v11 = vpack.c.bf16 %v811_v10, %v811_v10 }
 0x4e2   :  { %891 = vmatmul.bf16.vlgmr.msra.gmra.mxu1 %v812_v11 }
 0x4e3   :  { %v807_v12 = vpop.f32.mrf.mxu0 }
 0x55f   :  { %v892_v16 = vpop.f32.mrf.mxu1 }
 0x560   :  { %v893_v17 = vadd.f32 %v1464_v15, %v892_v16 }
 0x562   :  { %v898_v18 = vmax.f32 %v893_v17, 0.0 }
 0x564   :  { %v899_v19 = vpack.c.bf16 %v898_v18, %v898_v18 }
 0x566   :  { %978 = vmatmul.bf16.vlgmr.msra.gmra.mxu2 %v899_v19 }
 0x567   :  { %v894_v20 = vpop.f32.mrf.mxu1 }
 0x5e9   :  { %v979_v22 = vpop.f32.mrf.mxu2 }
 0x5ea   :  { %v980_v23 = vadd.f32 %v1465_v21, %v979_v22 }
 0x5ec   :  { %983 = vst [vmem:[#allocation5] sm:$0xff] %v980_v23 }
 0x5ed   :  { %994 = dma.vmem_to_hbm [thread:$0]  %s990_s15, 128, %s992_s18, [#allocation4]  }
 0x5f1   :  { %v981_v24 = vpop.f32.mrf.mxu2 }
 0x5f2   :  { %1516 = dma.done.wait [#allocation4], 128  }
 0x5f3   :  { %1517 = vsyncadd [#allocation4], 4294967168 }
 0x5f4   :  { %999 = vsyncpa [#allocation3], 1 }
 0x5f5   :  { %1000 = vsyncpa [#allocation4], 1 }

</bundles_post_ra>
